<compile_context>
chip_gen: v7x
topology: tpu7x:2x2x1
jax: 0.10.0
libtpu: 0.0.40
codegen_flags: <defaults>
</compile_context>

<pallas_src>
import functools

import jax
import jax.numpy as jnp
from jax import lax
from jax.experimental import pallas as pl
from jax.experimental.pallas import tpu as pltpu


def _round_up(x, m):
    return ((x + m - 1) // m) * m


def _vmem_capacity_bytes():
    try:
        return int(pltpu.get_tpu_info().vmem_capacity_bytes)
    except Exception:
        return 64 * 1024 * 1024  # conservative fallback (v7x per-core VMEM)


# ---------------------------------------------------------------------------
# Fused single-pass kernel: x fully resident in VMEM.
# ---------------------------------------------------------------------------
def _fused_kernel(x_ref, w1t_ref, b1_ref, w2t_ref, b2_ref, out_ref, *, inv_s):
    xf = x_ref[...].astype(jnp.float32)                # (B, C, S)
    avg = jnp.sum(xf, axis=-1) * inv_s                 # (B, C), true-S mean
    mx = jnp.max(xf, axis=-1)                          # (B, C)

    w1t = w1t_ref[...]                                 # (C, Cinner), f32
    b1 = b1_ref[...]                                   # (1, Cinner)
    w2t = w2t_ref[...]                                 # (Cinner, C)
    b2 = b2_ref[...]                                   # (1, C)

    # Two tiny first-layer dots kept separate for robust lowering (MXU work is
    # negligible here; the op is HBM-bound).  Second (linear) layer is shared:
    # (h_avg + h_max) @ w2t + 2*b2 == mlp(avg) + mlp(max)  -- NOT a bug.
    h_avg = jnp.maximum(jnp.dot(avg, w1t, preferred_element_type=jnp.float32) + b1, 0.0)
    h_max = jnp.maximum(jnp.dot(mx, w1t, preferred_element_type=jnp.float32) + b1, 0.0)
    att = jnp.dot(h_avg + h_max, w2t, preferred_element_type=jnp.float32) + 2.0 * b2
    scale = jax.nn.sigmoid(att).astype(out_ref.dtype)  # (B, C)

    out_ref[...] = x_ref[...] * scale[:, :, None]


# ---------------------------------------------------------------------------
# Tiled pass 1: pooled stats over S-tiles, MLP + sigmoid on the last tile.
# ---------------------------------------------------------------------------
def _pool_mlp_kernel(x_ref, w1t_ref, b1_ref, w2t_ref, b2_ref, scale_ref,
                     sum_acc, max_acc, *, s_rem, inv_s):
    si = pl.program_id(0)
    n_s = pl.num_programs(0)

    @pl.when(si == 0)
    def _init():
        sum_acc[...] = jnp.zeros_like(sum_acc)
        max_acc[...] = jnp.full_like(max_acc, -jnp.inf)

    # Hot path: full tiles, no masking, just load -> add / max.
    @pl.when(si < n_s - 1)
    def _accumulate_full():
        xf = x_ref[...].astype(jnp.float32)            # (B, C, s_tile)
        sum_acc[...] += jnp.sum(xf, axis=-1)
        max_acc[...] = jnp.maximum(max_acc[...], jnp.max(xf, axis=-1))

    # Last tile: mask undefined out-of-bounds lanes of the partial block
    # (mandatory -- there is no host-side padding), then finalize the MLP.
    @pl.when(si == n_s - 1)
    def _last_and_finalize():
        xf = x_ref[...].astype(jnp.float32)
        if s_rem != 0:
            lane = lax.broadcasted_iota(jnp.int32, xf.shape, 2)
            valid = lane < s_rem
            xf_sum = jnp.where(valid, xf, 0.0)
            xf_max = jnp.where(valid, xf, -jnp.inf)
        else:
            xf_sum = xf
            xf_max = xf

        total_sum = sum_acc[...] + jnp.sum(xf_sum, axis=-1)            # (B, C)
        total_max = jnp.maximum(max_acc[...], jnp.max(xf_max, axis=-1))

        avg = total_sum * inv_s
        w1t = w1t_ref[...]
        b1 = b1_ref[...]
        w2t = w2t_ref[...]
        b2 = b2_ref[...]
        # Shared second (linear) matmul: (h_avg+h_max)@w2t + 2*b2 == mlp(avg)+mlp(max).
        h_avg = jnp.maximum(jnp.dot(avg, w1t, preferred_element_type=jnp.float32) + b1, 0.0)
        h_max = jnp.maximum(jnp.dot(total_max, w1t, preferred_element_type=jnp.float32) + b1, 0.0)
        att = jnp.dot(h_avg + h_max, w2t, preferred_element_type=jnp.float32) + 2.0 * b2
        scale_ref[...] = jax.nn.sigmoid(att)


# ---------------------------------------------------------------------------
# Tiled pass 2: out = x * scale, broadcast over the spatial (lane) axis.
# ---------------------------------------------------------------------------
def _scale_mul_kernel(scale_ref, x_ref, out_ref):
    # scale is already in x.dtype (cast once in the wrapper, not per grid step).
    out_ref[...] = x_ref[...] * scale_ref[...][:, :, None]


def channel_gate(x, w1, b1, w2, b2, *, force_tiled=False, max_lanes=None):
    """x: (B, C, D, H, W). w1: (Cinner, C), b1: (Cinner,), w2: (C, Cinner), b2: (C,)."""
    B, C, D, H, W = x.shape
    S = D * H * W
    x_flat = x.reshape(B, C, S)
    itemsize = jnp.dtype(x.dtype).itemsize
    Cinner = w1.shape[0]

    # Pre-transpose the tiny MLP weights at trace time (no in-kernel XLU work).
    w1t = jnp.transpose(w1).astype(jnp.float32)   # (C, Cinner)
    w2t = jnp.transpose(w2).astype(jnp.float32)   # (Cinner, C)
    b1_2d = b1.reshape(1, -1).astype(jnp.float32)
    b2_2d = b2.reshape(1, -1).astype(jnp.float32)

    vmem_cap = _vmem_capacity_bytes()
    x_bytes = B * C * S * itemsize
    weight_bytes = 4 * (w1.size + w2.size + b1.size + b2.size)

    # ---- Fused single-pass path (x resident in VMEM) -------------------------
    # Footprint estimate: x + out (native dtype) + one f32 working copy + weights.
    fused_need = 2 * x_bytes + B * C * S * 4 + weight_bytes + (1 << 20)
    fused_ok = (not force_tiled) and fused_need <= int(0.35 * vmem_cap)
    if fused_ok:
        vmem_limit = int(min(max(int(fused_need * 1.5), 32 * 1024 * 1024),
                             int(0.9 * vmem_cap)))
        fused_cost = pl.CostEstimate(
            flops=int(3 * B * C * S + 4 * B * C * Cinner + 2 * B * Cinner * C),
            transcendentals=int(B * C),
            bytes_accessed=int(2 * x_bytes + weight_bytes),
        )
        out_flat = pl.pallas_call(
            functools.partial(_fused_kernel, inv_s=1.0 / float(S)),
            out_shape=jax.ShapeDtypeStruct((B, C, S), x.dtype),
            in_specs=[pl.BlockSpec(memory_space=pltpu.VMEM)] * 5,
            out_specs=pl.BlockSpec(memory_space=pltpu.VMEM),
            compiler_params=pltpu.CompilerParams(vmem_limit_bytes=vmem_limit),
            cost_estimate=fused_cost,
        )(x_flat, w1t, b1_2d, w2t, b2_2d)
        return out_flat.reshape(B, C, D, H, W)

    # ---- Tiled two-pass path --------------------------------------------------
    # Lane-dense S tiling.  Target ~6 MiB blocks (generation-aware via VMEM
    # capacity) so pass 2's four pipelined buffers (x in + out, double-buffered)
    # plus residents fit the scoped VMEM budget on every generation (incl. v7x).
    per_block_target = min(6 * 1024 * 1024, vmem_cap // 16)
    lane_bytes = max(1, B * C * itemsize)
    lanes = max(128, (per_block_target // lane_bytes) // 128 * 128)
    if max_lanes is not None:
        lanes = max(128, min(lanes, (max_lanes // 128) * 128))
    s_tile = int(min(_round_up(S, 128), lanes))
    # TODO(synk): add a channel-tiling grid axis when B*C*128*itemsize alone
    # exceeds the per-block budget (very large B*C); for now we raise the
    # scoped-VMEM limit to cover it.
    block_bytes = B * C * s_tile * itemsize
    vmem_need = (4 * block_bytes + B * C * s_tile * 4 + weight_bytes
                 + 8 * B * C * 4 + (1 << 20))
    vmem_limit = int(min(max(vmem_need, 32 * 1024 * 1024), int(0.9 * vmem_cap)))

    n_s = pl.cdiv(S, s_tile)      # NO host-side padding: last block is partial
    s_rem = S % s_tile

    # ---- Pass 1: pooled stats + MLP + sigmoid -> (B, C) scale -----------------
    # TODO(synk): on v7x (2 TensorCores) shard this pooling sweep across cores
    # with a leading 'parallel' grid axis and per-core partial sum/max outputs
    # combined in a tiny epilogue.
    pool_cost = pl.CostEstimate(
        flops=int(2 * B * C * S + 4 * B * C * Cinner + 2 * B * Cinner * C),
        transcendentals=int(B * C),
        bytes_accessed=int(x_bytes + weight_bytes + B * C * 4),
    )
    scale = pl.pallas_call(
        functools.partial(_pool_mlp_kernel, s_rem=s_rem, inv_s=1.0 / float(S)),
        out_shape=jax.ShapeDtypeStruct((B, C), jnp.float32),
        grid_spec=pltpu.PrefetchScalarGridSpec(
            num_scalar_prefetch=0,
            grid=(n_s,),
            in_specs=[
                pl.BlockSpec((B, C, s_tile), lambda s: (0, 0, s)),   # x (pipelined)
                pl.BlockSpec(memory_space=pltpu.VMEM),               # w1t (resident)
                pl.BlockSpec(memory_space=pltpu.VMEM),               # b1
                pl.BlockSpec(memory_space=pltpu.VMEM),               # w2t
                pl.BlockSpec(memory_space=pltpu.VMEM),               # b2
            ],
            out_specs=pl.BlockSpec((B, C), lambda s: (0, 0)),        # written on last tile
            scratch_shapes=[pltpu.VMEM((B, C), jnp.float32),          # running sum
                            pltpu.VMEM((B, C), jnp.float32)],         # running max
        ),
        compiler_params=pltpu.CompilerParams(
            dimension_semantics=("arbitrary",),
            vmem_limit_bytes=vmem_limit),
        cost_estimate=pool_cost,
    )(x_flat, w1t, b1_2d, w2t, b2_2d)

    # ---- Pass 2: broadcast multiply -------------------------------------------
    # NOTE: intentionally no input_output_aliases (x -> out): the caller may
    # still need x, and aliasing only pays off with buffer donation.
    scale_x = scale.astype(x.dtype)   # cast once here, not per grid step
    mul_cost = pl.CostEstimate(
        flops=int(B * C * S),
        transcendentals=0,
        bytes_accessed=int(2 * x_bytes + B * C * itemsize),
    )
    out_flat = pl.pallas_call(
        _scale_mul_kernel,
        out_shape=jax.ShapeDtypeStruct((B, C, S), x.dtype),
        grid_spec=pltpu.PrefetchScalarGridSpec(
            num_scalar_prefetch=0,
            grid=(n_s,),
            in_specs=[
                pl.BlockSpec(memory_space=pltpu.VMEM),               # scale (small, resident)
                pl.BlockSpec((B, C, s_tile), lambda s: (0, 0, s)),   # x
            ],
            out_specs=pl.BlockSpec((B, C, s_tile), lambda s: (0, 0, s)),
        ),
        compiler_params=pltpu.CompilerParams(
            dimension_semantics=("parallel",),
            vmem_limit_bytes=vmem_limit),
        cost_estimate=mul_cost,
    )(scale_x, x_flat)

    return out_flat.reshape(B, C, D, H, W)


# ---------------------------------------------------------------------------
# Reference + tests
# ---------------------------------------------------------------------------
def _reference(x, w1, b1, w2, b2):
    B, C = x.shape[0], x.shape[1]
    xf = x.reshape(B, C, -1).astype(jnp.float32)
    avg_pool = jnp.mean(xf, axis=-1)
    max_pool = jnp.max(xf, axis=-1)

    def mlp(p):
        h = jnp.maximum(p @ w1.T + b1, 0.0)
        return h @ w2.T + b2

    att = mlp(avg_pool) + mlp(max_pool)
    scale = jax.nn.sigmoid(att)
    return (xf * scale[:, :, None]).reshape(x.shape).astype(x.dtype)


def _run_case(key, B, C, D, H, W, reduction_ratio=8, **kw):
    Cinner = max(C // reduction_ratio, 1)
    kx, k1, k2, k3, k4 = jax.random.split(key, 5)

    x = jax.random.normal(kx, (B, C, D, H, W), dtype=jnp.float32)
    w1 = jax.random.normal(k1, (Cinner, C), dtype=jnp.float32) * (1.0 / jnp.sqrt(C))
    b1 = jax.random.normal(k2, (Cinner,), dtype=jnp.float32) * 0.01
    w2 = jax.random.normal(k3, (C, Cinner), dtype=jnp.float32) * (1.0 / jnp.sqrt(Cinner))
    b2 = jax.random.normal(k4, (C,), dtype=jnp.float32) * 0.01

    out = jax.block_until_ready(channel_gate(x, w1, b1, w2, b2, **kw))
    ref = _reference(x, w1, b1, w2, b2)
    assert out.shape == x.shape and out.dtype == x.dtype
    assert jnp.allclose(out, ref, atol=1e-5, rtol=1e-5), "mismatch vs reference"


if __name__ == "__main__":
    key = jax.random.PRNGKey(0)
    ks = jax.random.split(key, 4)
    # Fused VMEM-resident path, aligned spatial volume (S = 256).
    _run_case(ks[0], B=2, C=16, D=4, H=8, W=8)
    # Fused path, ragged spatial volume (S = 105) -- no host pad/slice anywhere.
    _run_case(ks[1], B=2, C=16, D=3, H=5, W=7)
    # Tiled two-pass path, aligned S (S = 512 -> two 256-lane tiles).
    _run_case(ks[2], B=2, C=16, D=4, H=8, W=16, force_tiled=True, max_lanes=256)
    # Tiled two-pass path, ragged S (S = 945 -> 4 tiles, masked partial last tile).
    _run_case(ks[3], B=2, C=16, D=3, H=9, W=35, force_tiled=True, max_lanes=256)
    print("KERNEL_OK")
</pallas_src>

<mosaic_0001>
module attributes {stable_mosaic.version = 11 : i64} {
  func.func @_fused_kernel(%arg0: memref<2x16x256xf32, #tpu.memory_space<vmem>>, %arg1: memref<16x2xf32, #tpu.memory_space<vmem>>, %arg2: memref<1x2xf32, #tpu.memory_space<vmem>>, %arg3: memref<2x16xf32, #tpu.memory_space<vmem>>, %arg4: memref<1x16xf32, #tpu.memory_space<vmem>>, %arg5: memref<2x16x256xf32, #tpu.memory_space<vmem>>) attributes {dimension_semantics = [], scalar_prefetch = 0 : i64, scratch_operands = 0 : i64, tpu.core_type = #tpu.core_type<tc>} {
    %c0 = arith.constant 0 : index
    %c0_0 = arith.constant 0 : index
    %c0_1 = arith.constant 0 : index
    %0 = vector.load %arg0[%c0, %c0_0, %c0_1] : memref<2x16x256xf32, #tpu.memory_space<vmem>>, vector<2x16x256xf32>
    %cst = arith.constant dense<0.000000e+00> : vector<2x16xf32>
    %1 = vector.multi_reduction <add>, %0, %cst [2] : vector<2x16x256xf32> to vector<2x16xf32>
    %cst_2 = arith.constant 3.906250e-03 : f32
    %2 = vector.broadcast %cst_2 : f32 to vector<2x16xf32>
    %3 = arith.mulf %1, %2 : vector<2x16xf32>
    %cst_3 = arith.constant dense<0xFF800000> : vector<2x16xf32>
    %4 = vector.multi_reduction <maximumf>, %0, %cst_3 [2] : vector<2x16x256xf32> to vector<2x16xf32>
    %c0_4 = arith.constant 0 : index
    %c0_5 = arith.constant 0 : index
    %5 = vector.load %arg1[%c0_4, %c0_5] : memref<16x2xf32, #tpu.memory_space<vmem>>, vector<16x2xf32>
    %c0_6 = arith.constant 0 : index
    %c0_7 = arith.constant 0 : index
    %6 = vector.load %arg2[%c0_6, %c0_7] : memref<1x2xf32, #tpu.memory_space<vmem>>, vector<1x2xf32>
    %c0_8 = arith.constant 0 : index
    %c0_9 = arith.constant 0 : index
    %7 = vector.load %arg3[%c0_8, %c0_9] : memref<2x16xf32, #tpu.memory_space<vmem>>, vector<2x16xf32>
    %c0_10 = arith.constant 0 : index
    %c0_11 = arith.constant 0 : index
    %8 = vector.load %arg4[%c0_10, %c0_11] : memref<1x16xf32, #tpu.memory_space<vmem>>, vector<1x16xf32>
    %cst_12 = arith.constant dense<0.000000e+00> : vector<2x2xf32>
    %9 = tpu.matmul %3, %5, %cst_12 {dimension_numbers = #tpu.dot_dimension_numbers<[1], [0], [0], [1], [0, 0, 1, 1], [], []>} : vector<2x16xf32>, vector<16x2xf32>, vector<2x2xf32> -> vector<2x2xf32>
    %10 = vector.broadcast %6 : vector<1x2xf32> to vector<2x2xf32>
    %11 = arith.addf %9, %10 : vector<2x2xf32>
    %cst_13 = arith.constant 0.000000e+00 : f32
    %12 = vector.broadcast %cst_13 : f32 to vector<2x2xf32>
    %13 = arith.maximumf %11, %12 : vector<2x2xf32>
    %cst_14 = arith.constant dense<0.000000e+00> : vector<2x2xf32>
    %14 = tpu.matmul %4, %5, %cst_14 {dimension_numbers = #tpu.dot_dimension_numbers<[1], [0], [0], [1], [0, 0, 1, 1], [], []>} : vector<2x16xf32>, vector<16x2xf32>, vector<2x2xf32> -> vector<2x2xf32>
    %15 = vector.broadcast %6 : vector<1x2xf32> to vector<2x2xf32>
    %16 = arith.addf %14, %15 : vector<2x2xf32>
    %cst_15 = arith.constant 0.000000e+00 : f32
    %17 = vector.broadcast %cst_15 : f32 to vector<2x2xf32>
    %18 = arith.maximumf %16, %17 : vector<2x2xf32>
    %19 = arith.addf %13, %18 : vector<2x2xf32>
    %cst_16 = arith.constant dense<0.000000e+00> : vector<2x16xf32>
    %20 = tpu.matmul %19, %7, %cst_16 {dimension_numbers = #tpu.dot_dimension_numbers<[1], [0], [0], [1], [0, 0, 1, 1], [], []>} : vector<2x2xf32>, vector<2x16xf32>, vector<2x16xf32> -> vector<2x16xf32>
    %cst_17 = arith.constant 2.000000e+00 : f32
    %21 = vector.broadcast %cst_17 : f32 to vector<1x16xf32>
    %22 = arith.mulf %21, %8 : vector<1x16xf32>
    %23 = vector.broadcast %22 : vector<1x16xf32> to vector<2x16xf32>
    %24 = arith.addf %20, %23 : vector<2x16xf32>
    %25 = arith.negf %24 : vector<2x16xf32>
    %26 = math.exp %25 : vector<2x16xf32>
    %cst_18 = arith.constant 1.000000e+00 : f32
    %27 = vector.broadcast %cst_18 : f32 to vector<2x16xf32>
    %28 = arith.addf %27, %26 : vector<2x16xf32>
    %29 = arith.divf %27, %28 : vector<2x16xf32>
    %c0_19 = arith.constant 0 : index
    %c0_20 = arith.constant 0 : index
    %c0_21 = arith.constant 0 : index
    %30 = vector.load %arg0[%c0_19, %c0_20, %c0_21] : memref<2x16x256xf32, #tpu.memory_space<vmem>>, vector<2x16x256xf32>
    %31 = vector.shape_cast %29 : vector<2x16xf32> to vector<2x16x1xf32>
    %32 = vector.broadcast %31 : vector<2x16x1xf32> to vector<2x16x256xf32>
    %33 = arith.mulf %30, %32 : vector<2x16x256xf32>
    %c0_22 = arith.constant 0 : index
    %c0_23 = arith.constant 0 : index
    %c0_24 = arith.constant 0 : index
    %34 = vector.load %arg5[%c0_22, %c0_23, %c0_24] : memref<2x16x256xf32, #tpu.memory_space<vmem>>, vector<2x16x256xf32>
    tpu.vector_store %arg5[%c0_22, %c0_23, %c0_24], %33 {strides = array<i32>} : memref<2x16x256xf32, #tpu.memory_space<vmem>>, vector<2x16x256xf32>,
    return
  }
}

</mosaic_0001>

<bundles_post_ra>
// kernel: tpu_custom_call.1
= control target key start
LH: loop header
LB: loop body
LE: loop exit
PB: predicated region body
PF: predicated region fallthrough
CT: control target
= control target key end

     0   :  { %10 = vsyncpa [#allocation3], 0  ;;  %s662_s0 = inlined_call_operand.hbm [shape: f32[2,16,256], index: 0, kind: input, shape index: {}]   ;;  %s663_s1 = inlined_call_operand.vmem [shape: f32[16,2], index: 1, kind: input, shape index: {}]   ;;  %s664_s2 = inlined_call_operand.vmem [shape: f32[1,2], index: 2, kind: input, shape index: {}]   ;;  %s665_s3 = inlined_call_operand.vmem [shape: f32[2,16], index: 3, kind: input, shape index: {}]   ;;  %s666_s4 = inlined_call_operand.vmem [shape: f32[1,16], index: 4, kind: input, shape index: {}]   ;;  %s667_s5 = inlined_call_operand.hbm [shape: f32[2,16,256], index: 5, kind: output, shape index: {}]  }
   0x1   :  { %11 = vsyncpa [#allocation4], 0  ;;  %s525_s18 = smov [#allocation2]   ;;  %s477_s22 = scalar_lea.hbm %s662_s0, 1024 }
   0x2   :  { %s17_s19 = sshll.u32 %s525_s18, 4  ;;  %p478_p0 = scmp.ne.s32.totalorder %s662_s0, %s477_s22  ;;  %s18_s19 = int_to_ptr.vmem [resolvable:$true] %s17_s19 }
   0x3   :  { %p481_p1 = scmp.lt.u32.totalorder %s477_s22, %s662_s0 }
   0x5   :  { %p483_p2 = pnand %p481_p1, %p478_p0 }
   0x7   :  { %486 = shalt.err (!%p483_p2)
}
   0x8   :  { %s487_s27 = scalar_lea.vmem %s18_s19, 1024  ;;  %p492_p4 = scmp.lt.s32.totalorder %s18_s19, %s18_s19 }
   0x9   :  { %p488_p3 = scmp.ne.s32.totalorder %s18_s19, %s487_s27  ;;  %p493_p5 = scmp.lt.s32.totalorder %s487_s27, %s487_s27 }
   0xb   :  { %p494_p6 = por %p493_p5, %p492_p4 }
   0xd   :  { %p495_p7 = pnand %p494_p6, %p488_p3 }
   0xf   :  { %498 = shalt.err (!%p495_p7)
}
  0x10   :  { %s526_s28 = smov 256   ;;  %s527_s29 = smov 16  }
  0x11   :  { %23 = dma.hbm_to_vmem [thread:$0]  %s662_s0, 1024, %s18_s19, [#allocation3], %s526_s28, %s526_s28, %s527_s29  }
  0x12   :  { %521 = dma.done.wait [#allocation3], 1024  }
  0x13   :  { %522 = vsyncadd [#allocation3], 4294966272  ;;  %v577_v0 = vld [vmem:[#allocation2 + $0x20] sm:$0xff]  ;;  %v579_v1 = vld [vmem:[#allocation2 + $0x28] sm:$0xff]  ;;  %v528_v19 = vmov 0.0|0.0   ;;  %vm529_vm0 = vmmov 0   ;;  %v86_v21 = vlaneseq }
  0x14   :  { %v581_v2 = vld [vmem:[#allocation2] sm:$0xff]  ;;  %v49_v3 = vadd.f32 %v579_v1, %v577_v0  ;;  %v585_v4 = vld [vmem:[#allocation2 + $0x8] sm:$0xff]  ;;  %v587_v5 = vld [vmem:[#allocation2 + $0x30] sm:$0xff]  ;;  %v65_v15 = vmax.f32 %v577_v0, %v579_v1  ;;  %460 = vmatprep.subr.bf16.mxu0 %v528_v19  ;;  %463 = vmatprep.subr.bf16.mxu1 %v528_v19  ;;  %v530_v20 = vmov 0.0   ;;  %vm97_vm1 = vcmask 130112  }
  0x15   :  { %v589_v6 = vld [vmem:[#allocation2 + $0x38] sm:$0xff]  ;;  %v43_v7 = vadd.f32 %v585_v4, %v581_v2  ;;  %v593_v8 = vld [vmem:[#allocation2 + $0x10] sm:$0xff]  ;;  %v59_v13 = vmax.f32 %v581_v2, %v585_v4  ;;  %v71_v16 = vld [vmem:[%s663_s1] sm:$0xff]  ;;  %445 = vmatprep.mubr.msk.f32.mxu0 %vm529_vm0, %v530_v20  ;;  %452 = vmatprep.mubr.msk.f32.mxu1 %vm529_vm0, %v530_v20  ;;  %v87_v22 = vand.u32 127, %v86_v21  ;;  %v617_v23 = vshrl.u32 %v86_v21, 7 }
  0x16   :  { %v595_v9 = vld [vmem:[#allocation2 + $0x18] sm:$0xff]  ;;  %50 = vadd.xlane.f32.xlu1 %v49_v3  ;;  %v52_v10 = vadd.f32 %v589_v6, %v587_v5  ;;  %v68_v14 = vmax.f32 %v587_v5, %v589_v6  ;;  %v72_v17 = vld [vmem:[%s663_s1 + $0x8] sm:$0xff]  ;;  %vm108_vm2 = vcmask 1041409   ;;  %vm110_vm3 = vcmask 130048   ;;  %v74_v53 = vld [vmem:[%s665_s3] sm:$0x3] }
  0x17   :  { %44 = vadd.xlane.f32.xlu0 %v43_v7  ;;  %v46_v11 = vadd.f32 %v595_v9, %v593_v8  ;;  %v62_v12 = vmax.f32 %v593_v8, %v595_v9  ;;  %v461_v18 = vpack.c.bf16 %v72_v17, %v71_v16  ;;  %v92_v24 = vadd.s32 4294967288, %v87_v22  ;;  %v427_v56 = vld [vmem:[%s664_s2] ss:$0 sm:$0xff]  ;;  %s531_s2 = smov [#allocation5]  }
  0x18   :  { %v90_v27 = vsub.s32 %v87_v22, %v617_v23  ;;  %vm292_vm4 = vcmask 1041408   ;;  %vm288_vm5 = vcmask 15360   ;;  %v75_v3 = vld [vmem:[%s666_s4] sm:$0x1]  ;;  %s415_s3 = sshll.u32 %s531_s2, 4  ;;  %s416_s3 = int_to_ptr.vmem [resolvable:$true] %s415_s3 }
  0x19   :  { %462 = vmatpush3.bf16.msra.mxu0 %v461_v18  ;;  %465 = vmatpush3.bf16.msra.mxu1 %v461_v18  ;;  %v95_v29 = vsub.s32 %v92_v24, %v617_v23  ;;  %v281_v7 = vmul.f32 2.0, %v75_v3  ;;  %s499_s4 = scalar_lea.vmem %s416_s3, 1024  ;;  %p504_p9 = scmp.lt.s32.totalorder %s416_s3, %s416_s3 }
  0x1a   :  { %53 = vadd.xlane.f32.xlu1 %v52_v10  ;;  %455 = vmatprep.subr.mxu0 %v530_v20  ;;  %v285_v10 = vsub.s32 0, %v617_v23  ;;  %p500_p8 = scmp.ne.s32.totalorder %s416_s3, %s499_s4  ;;  %p505_p10 = scmp.lt.s32.totalorder %s499_s4, %s499_s4 }
  0x1b   :  { %47 = vadd.xlane.f32.xlu0 %v46_v11 }
  0x1c   :  { %v286_v11 = vrot.slane %v281_v7, %v285_v10  ;;  %p506_p11 = por %p505_p10, %p504_p9 }
  0x1e   :  { %63 = vmax.xlane.f32.xlu1 %v62_v12  ;;  %p507_p12 = pnand %p506_p11, %p500_p8 }
  0x1f   :  { %60 = vmax.xlane.f32.xlu0 %v59_v13 }
  0x22   :  { %69 = vmax.xlane.f32.xlu1 %v68_v14 }
  0x23   :  { %66 = vmax.xlane.f32.xlu0 %v65_v15 }
  0xa3   :  { %v51_v25 = vpop.xlane.xlu1 %50 }
  0xa4   :  { %v45_v26 = vpop.xlane.xlu0 %44  ;;  %v57_v28 = vmul.f32 0.00390625, %v51_v25 }
  0xa5   :  { %v55_v30 = vmul.f32 0.00390625, %v45_v26 }
  0xa6   :  { %v102_v35 = vrot.slane %v57_v28, %v90_v27 }
  0xa7   :  { %v54_v31 = vpop.xlane.xlu1 %53  ;;  %v91_v37 = vrot.slane %v55_v30, %v90_v27 }
  0xa8   :  { %v58_v32 = vmul.f32 0.00390625, %v54_v31  ;;  %v48_v33 = vpop.xlane.xlu0 %47 }
  0xa9   :  { %v56_v34 = vmul.f32 0.00390625, %v48_v33 }
  0xaa   :  { %v106_v36 = vrot.slane %v58_v32, %v95_v29 }
  0xab   :  { %v96_v38 = vrot.slane %v56_v34, %v95_v29  ;;  %v64_v39 = vpop.xlane.xlu1 %63 }
  0xac   :  { %v61_v40 = vpop.xlane.xlu0 %60  ;;  %v107_v41 = vsel %vm97_vm1, %v106_v36, %v102_v35  ;;  %v195_v44 = vrot.slane %v64_v39, %v95_v29 }
  0xad   :  { %v98_v42 = vsel %vm97_vm1, %v96_v38, %v91_v37  ;;  %v191_v45 = vrot.slane %v61_v40, %v90_v27 }
  0xae   :  { %v109_v43 = vsel %vm108_vm2, %v107_v41, %v98_v42 }
  0xaf   :  { %446 = vmatmul.mubr.msk.f32.vlgmr.msra.gmra.mrb[0].mxu0 %vm110_vm3, %v109_v43  ;;  %v70_v46 = vpop.xlane.xlu1 %69  ;;  %v196_v50 = vsel %vm97_vm1, %v195_v44, %v191_v45 }
  0xb0   :  { %v204_v47 = vrot.slane %v70_v46, %v95_v29  ;;  %v67_v48 = vpop.xlane.xlu0 %66  ;;  %457 = vmatprep.mubr.msk.f32.mxu0 %vm529_vm0, %v530_v20  ;;  %456 = vmatpush3.msk.msra.mxu0 %vm292_vm4, %v74_v53  ;;  %v385_v20 = vsub.s32 1, %v617_v23 }
  0xb1   :  { %v200_v49 = vrot.slane %v67_v48, %v90_v27 }
  0xb3   :  { %v205_v51 = vsel %vm97_vm1, %v204_v47, %v200_v49 }
  0xb4   :  { %v206_v52 = vsel %vm108_vm2, %v205_v51, %v196_v50 }
  0xb5   :  { %453 = vmatmul.mubr.msk.f32.vlgmr.msra.gmra.mrb[0].mxu1 %vm110_vm3, %v206_v52 }
 0x182   :  { %v179_v54 = vpop.f32.mrb[0].mxu0 }
 0x183   :  { %v447_v55 = vpop.f32.mrb[1].mxu0  ;;  %v180_v57 = vadd.f32 %v427_v56, %v179_v54 }
 0x185   :  { %v183_v61 = vmax.f32 %v180_v57, 0.0 }
 0x188   :  { %v275_v58 = vpop.f32.mrb[0].mxu1 }
 0x189   :  { %v276_v59 = vadd.f32 %v427_v56, %v275_v58  ;;  %v454_v60 = vpop.f32.mrb[1].mxu1 }
 0x18b   :  { %v279_v62 = vmax.f32 %v276_v59, 0.0 }
 0x18d   :  { %v280_v63 = vadd.f32 %v279_v62, %v183_v61 }
 0x18f   :  { %458 = vmatmul.mubr.msk.f32.vlgmr.msra.gmra.mrb[2].mxu0 %vm288_vm5, %v280_v63 }
 0x262   :  { %v362_v12 = vpop.f32.mrb[2].mxu0 }
 0x263   :  { %v363_v13 = vadd.f32 %v362_v12, %v286_v11  ;;  %v459_v14 = vpop.f32.mrb[3].mxu0 }
 0x265   :  { %v432_v15 = vmul.f32 -1.442695, %v363_v13 }
 0x267   :  { %473 = vpow2.f32 %v432_v15 }
 0x271   :  { %v474_v16 = vpop.eup %473 }
 0x272   :  { %v369_v17 = vadd.f32 1.0, %v474_v16 }
 0x274   :  { %475 = vrcp.f32 %v369_v17 }
 0x27e   :  { %v476_v18 = vpop.eup %475 }
 0x27f   :  { %v375_v19 = vrot.slane %v476_v18, %v285_v10  ;;  %v386_v21 = vrot.slane %v476_v18, %v385_v20 }
 0x281   :  { %381 = vbcast.lane.b32.xlu1 %v375_v19, 264  ;;  %377 = vbcast.lane.b32.xlu0 %v375_v19, 256 }
 0x285   :  { %388 = vbcast.lane.b32.xlu1 %v386_v21, 256 }
 0x289   :  { %392 = vbcast.lane.b32.xlu1 %v386_v21, 264 }
 0x2f3   :  { %v382_v22 = vpop.permute.xlu1 %381  ;;  %v378_v24 = vpop.permute.xlu0 %377 }
 0x2f4   :  { %v396_v25 = vmul.f32 %v382_v22, %v593_v8  ;;  %v397_v26 = vmul.f32 %v382_v22, %v595_v9  ;;  %v394_v27 = vmul.f32 %v378_v24, %v581_v2  ;;  %v395_v28 = vmul.f32 %v378_v24, %v585_v4 }
 0x2f6   :  { %404 = vst [vmem:[#allocation5 + $0x10] sm:$0xff] %v396_v25  ;;  %405 = vst [vmem:[#allocation5 + $0x18] sm:$0xff] %v397_v26 }
 0x2f7   :  { %402 = vst [vmem:[#allocation5] sm:$0xff] %v394_v27  ;;  %403 = vst [vmem:[#allocation5 + $0x8] sm:$0xff] %v395_v28  ;;  %v389_v23 = vpop.permute.xlu1 %388 }
 0x2f8   :  { %v398_v29 = vmul.f32 %v389_v23, %v577_v0  ;;  %v399_v30 = vmul.f32 %v389_v23, %v579_v1 }
 0x2fa   :  { %406 = vst [vmem:[#allocation5 + $0x20] sm:$0xff] %v398_v29  ;;  %407 = vst [vmem:[#allocation5 + $0x28] sm:$0xff] %v399_v30 }
 0x2fb   :  { %v393_v8 = vpop.permute.xlu1 %392 }
 0x2fc   :  { %v400_v9 = vmul.f32 %v393_v8, %v587_v5  ;;  %v401_v2 = vmul.f32 %v393_v8, %v589_v6 }
 0x2fe   :  { %408 = vst [vmem:[#allocation5 + $0x30] sm:$0xff] %v400_v9  ;;  %409 = vst [vmem:[#allocation5 + $0x38] sm:$0xff] %v401_v2 }
 0x2ff   :  { %510 = shalt.err (!%p507_p12)
}
 0x300   :  { %s511_s17 = scalar_lea.hbm %s667_s5, 1024 }
 0x301   :  { %p512_p13 = scmp.ne.s32.totalorder %s667_s5, %s511_s17  ;;  %p515_p0 = scmp.lt.u32.totalorder %s511_s17, %s667_s5 }
 0x303   :  { %p517_p1 = pnand %p515_p0, %p512_p13 }
 0x305   :  { %520 = shalt.err (!%p517_p1)
}
 0x306   :  { %421 = dma.vmem_to_hbm [thread:$0]  %s416_s3, 1024, %s667_s5, [#allocation4], %s526_s28, %s526_s28, %s527_s29  }
 0x307   :  { %523 = dma.done.wait [#allocation4], 1024  }
 0x308   :  { %524 = vsyncadd [#allocation4], 4294966272 }
 0x309   :  { %425 = vsyncpa [#allocation3], 1 }
 0x30a   :  { %426 = vsyncpa [#allocation4], 1 }

</bundles_post_ra>
